<compile_context>
chip_gen: v7x
topology: tpu7x:2x2x1
jax: 0.10.0
libtpu: 0.0.40
codegen_flags: <defaults>
</compile_context>

<pallas_src>
import jax
import jax.numpy as jnp
from jax.experimental import pallas as pl
from jax.experimental.pallas import tpu as pltpu


_TARGET_BLOCK_BYTES = 8 * 1024 * 1024   # ~8 MiB per block buffer
_VMEM_LIMIT_BYTES = 48 * 1024 * 1024    # 2 in + 2 out bufs @ 8 MiB = 32 MiB resident


def _copy_kernel(x_ref, o_ref):
    # Identity copy of one tile; HBM<->VMEM movement is handled by the
    # BlockSpec pipeline (double-buffered across the 1-D grid).
    o_ref[...] = x_ref[...]


def _choose_block_rows(rows: int, row_bytes: int, sublane_mult: int) -> int:
    """Pick a block row count: big (amortize per-step overhead), packed-tile
    aligned, >= 2 grid blocks when possible (v7x megacore), divisor of rows
    when one is close (avoid masked tail stores)."""
    if rows <= sublane_mult:
        return rows
    # Largest block under the byte target, rounded down to the packed tile.
    target_rows = max(sublane_mult, _TARGET_BLOCK_BYTES // max(row_bytes, 1))
    target_rows -= target_rows % sublane_mult
    target_rows = max(target_rows, sublane_mult)
    # Megacore: ensure the grid has >= 2 blocks so both v7x TCs get work.
    half = pl.cdiv(rows, 2)
    half = pl.cdiv(half, sublane_mult) * sublane_mult  # round up to packed tile
    block = min(target_rows, half)
    if block >= rows:
        return rows
    # Prefer a divisor of `rows` (no partial last block) if one is nearby.
    stop = max(block // 2, sublane_mult - 1)
    for cand in range(block, stop, -sublane_mult):
        if rows % cand == 0:
            return cand
    return block


def _pallas_copy(x2d: jax.Array) -> jax.Array:
    """Tiled HBM->HBM copy (through VMEM) of a 2-D array, lane/sublane dense
    where the element count allows it."""
    n, f = x2d.shape
    total = n * f
    itemsize = x2d.dtype.itemsize
    # f32 -> 8, bf16 -> 16, int8/fp8 -> 32 (native packed tile height).
    sublane_mult = 8 * max(1, 4 // itemsize)

    # Prefer a (rows, lane) view with lane % 128 == 0 (unmasked full-width
    # vst) and rows % sublane_mult == 0 (fully packed sublanes).
    lane = None
    fallback_lane = None
    for cand in (2048, 1024, 512, 256, 128):
        if total % cand == 0:
            if fallback_lane is None:
                fallback_lane = cand
            if (total // cand) % sublane_mult == 0:
                lane = cand
                break
    if lane is None:
        lane = fallback_lane

    if lane is not None:
        rows = total // lane
        src = x2d.reshape(rows, lane)
    else:
        # Element count not a multiple of 128: keep the natural (N, F) shape.
        # Last block dim == full array dim is always legal; tiling over N keeps
        # blocks small and pipelined instead of staging the whole array in VMEM.
        # TODO(synk): N == 1 with a huge non-128-multiple F would still need a
        # pad-to-1024 + slice scheme; not needed for this module's shapes.
        src, rows, lane = x2d, n, f

    block_rows = _choose_block_rows(rows, lane * itemsize, sublane_mult)
    grid = (pl.cdiv(rows, block_rows),)

    out = pl.pallas_call(
        _copy_kernel,
        out_shape=jax.ShapeDtypeStruct(src.shape, src.dtype),
        grid=grid,
        in_specs=[pl.BlockSpec((block_rows, lane), lambda i: (i, 0))],
        out_specs=pl.BlockSpec((block_rows, lane), lambda i: (i, 0)),
        compiler_params=pltpu.CompilerParams(
            dimension_semantics=("parallel",),
            vmem_limit_bytes=_VMEM_LIMIT_BYTES,
        ),
        cost_estimate=pl.CostEstimate(
            flops=0,
            transcendentals=0,
            bytes_accessed=2 * total * itemsize,
        ),
    )(src)
    return out.reshape(n, f)


def unflatten(x: jax.Array, channel: int, height: int, width: int,
              *, use_pallas_copy: bool = False) -> jax.Array:
    """Pallas equivalent of Unflatten(channel, height, width).forward(x).

    x: (N, channel*height*width) -> (N, channel, height, width)

    Default path is a zero-cost metadata reshape (exactly torch .view).
    `use_pallas_copy=True` routes the data through the tiled Pallas copy
    kernel (for benchmarking the HBM memory path).
    """
    n, flat = x.shape
    assert flat == channel * height * width, (
        f"cannot unflatten {flat} elements into ({channel},{height},{width})"
    )

    if not use_pallas_copy:
        # torch.Tensor.view is metadata-only; jnp.reshape here is the same.
        return x.reshape(n, channel, height, width)

    return _pallas_copy(x).reshape(n, channel, height, width)


if __name__ == "__main__":
    key = jax.random.PRNGKey(0)
    k1, k2, k3 = jax.random.split(key, 3)

    # Primary shape consistent with the module: batch=2, channel=4, 16x16.
    N, C, H, W = 2, 4, 16, 16
    x = jax.random.normal(k1, (N, C * H * W), dtype=jnp.float32)

    y_view = unflatten(x, C, H, W)                           # metadata-only path
    y_kernel = unflatten(x, C, H, W, use_pallas_copy=True)   # Pallas copy path
    jax.block_until_ready(y_kernel)

    ref = x.reshape(N, C, H, W)
    assert y_view.shape == (N, C, H, W) and y_kernel.shape == (N, C, H, W)
    assert y_kernel.dtype == x.dtype
    assert bool(jnp.all(y_view == ref))
    assert bool(jnp.all(y_kernel == ref))

    # Larger (still small) input: exercises the multi-block, megacore-split grid.
    N2, C2, H2, W2 = 16, 8, 32, 32
    x2 = jax.random.normal(k2, (N2, C2 * H2 * W2), dtype=jnp.float32)
    y2 = unflatten(x2, C2, H2, W2, use_pallas_copy=True)
    jax.block_until_ready(y2)
    assert bool(jnp.all(y2 == x2.reshape(N2, C2, H2, W2)))

    # Element count not a multiple of 128: exercises the (N, F) fallback tiling.
    N3, C3, H3, W3 = 3, 5, 7, 9
    x3 = jax.random.normal(k3, (N3, C3 * H3 * W3), dtype=jnp.float32)
    y3 = unflatten(x3, C3, H3, W3, use_pallas_copy=True)
    jax.block_until_ready(y3)
    assert bool(jnp.all(y3 == x3.reshape(N3, C3, H3, W3)))

    print("KERNEL_OK")
</pallas_src>

<mosaic_0001>
module attributes {stable_mosaic.version = 11 : i64} {
  func.func @_copy_kernel(%arg0: i32, %arg1: memref<8x256xf32, #tpu.memory_space<vmem>>, %arg2: memref<8x256xf32, #tpu.memory_space<vmem>>) attributes {dimension_semantics = [#tpu.dimension_semantics<parallel>], iteration_bounds = array<i64: 1>, scalar_prefetch = 0 : i64, scratch_operands = 0 : i64, tpu.core_type = #tpu.core_type<tc>, window_params = [{transform_indices = @transform_0, window_bounds = array<i64: 8, 256>}, {transform_indices = @transform_1, window_bounds = array<i64: 8, 256>}]} {
    %c0 = arith.constant 0 : index
    %c0_0 = arith.constant 0 : index
    %0 = vector.load %arg1[%c0, %c0_0] : memref<8x256xf32, #tpu.memory_space<vmem>>, vector<8x256xf32>
    %c0_1 = arith.constant 0 : index
    %c0_2 = arith.constant 0 : index
    %1 = vector.load %arg2[%c0_1, %c0_2] : memref<8x256xf32, #tpu.memory_space<vmem>>, vector<8x256xf32>
    tpu.vector_store %arg2[%c0_1, %c0_2], %0 {strides = array<i32>} : memref<8x256xf32, #tpu.memory_space<vmem>>, vector<8x256xf32>,
    return
  }
  func.func @transform_0(%arg0: i32) -> (i32, i32) {
    %c0_i32 = arith.constant 0 : i32
    %c0_i32_0 = arith.constant 0 : i32
    return %arg0, %c0_i32 : i32, i32
  }
  func.func @transform_1(%arg0: i32) -> (i32, i32) {
    %c0_i32 = arith.constant 0 : i32
    %c0_i32_0 = arith.constant 0 : i32
    return %arg0, %c0_i32 : i32, i32
  }
}

</mosaic_0001>

<bundles_post_ra>
// kernel: tpu_custom_call.1
= control target key start
LH: loop header
LB: loop body
LE: loop exit
PB: predicated region body
PF: predicated region fallthrough
CT: control target
= control target key end

     0   :  { %6 = vsyncpa [#allocation3], 0  ;;  %s126_s0 = inlined_call_operand.hbm [shape: f32[8,256], index: 0, kind: input, shape index: {}]   ;;  %s127_s1 = inlined_call_operand.hbm [shape: f32[8,256], index: 1, kind: output, shape index: {}]  }
   0x1   :  { %7 = vsyncpa [#allocation4], 0  ;;  %s90_s6 = smov [#allocation2]   ;;  %s42_s10 = scalar_lea.hbm %s126_s0, 256 }
   0x2   :  { %s14_s7 = sshll.u32 %s90_s6, 4  ;;  %p43_p0 = scmp.ne.s32.totalorder %s126_s0, %s42_s10  ;;  %s15_s7 = int_to_ptr.vmem [resolvable:$true] %s14_s7 }
   0x3   :  { %p46_p1 = scmp.lt.u32.totalorder %s42_s10, %s126_s0 }
   0x5   :  { %p48_p2 = pnand %p46_p1, %p43_p0 }
   0x7   :  { %51 = shalt.err (!%p48_p2)
}
   0x8   :  { %s52_s15 = scalar_lea.vmem %s15_s7, 256  ;;  %p57_p4 = scmp.lt.s32.totalorder %s15_s7, %s15_s7 }
   0x9   :  { %p53_p3 = scmp.ne.s32.totalorder %s15_s7, %s52_s15  ;;  %p58_p5 = scmp.lt.s32.totalorder %s52_s15, %s52_s15 }
   0xb   :  { %p59_p6 = por %p58_p5, %p57_p4 }
   0xd   :  { %p60_p7 = pnand %p59_p6, %p53_p3 }
   0xf   :  { %63 = shalt.err (!%p60_p7)
}
  0x10   :  { %17 = dma.hbm_to_vmem [thread:$0]  %s126_s0, 256, %s15_s7, [#allocation3]  }
  0x11   :  { %86 = dma.done.wait [#allocation3], 256  }
  0x12   :  { %87 = vsyncadd [#allocation3], 4294967040  ;;  %s91_s18 = smov [#allocation5]   ;;  %v21_v0 = vld [vmem:[#allocation2] sm:$0xff]  ;;  %v22_v1 = vld [vmem:[#allocation2 + $0x8] sm:$0xff] }
  0x13   :  { %s31_s19 = sshll.u32 %s91_s18, 4  ;;  %23 = vst [vmem:[#allocation5] sm:$0xff] %v21_v0  ;;  %24 = vst [vmem:[#allocation5 + $0x8] sm:$0xff] %v22_v1  ;;  %s32_s19 = int_to_ptr.vmem [resolvable:$true] %s31_s19 }
  0x14   :  { %s64_s20 = scalar_lea.vmem %s32_s19, 256  ;;  %p69_p9 = scmp.lt.s32.totalorder %s32_s19, %s32_s19 }
  0x15   :  { %p65_p8 = scmp.ne.s32.totalorder %s32_s19, %s64_s20  ;;  %p70_p10 = scmp.lt.s32.totalorder %s64_s20, %s64_s20 }
  0x17   :  { %p71_p11 = por %p70_p10, %p69_p9 }
  0x19   :  { %p72_p12 = pnand %p71_p11, %p65_p8 }
  0x1b   :  { %75 = shalt.err (!%p72_p12)
}
  0x1c   :  { %s76_s0 = scalar_lea.hbm %s127_s1, 256 }
  0x1d   :  { %p77_p13 = scmp.ne.s32.totalorder %s127_s1, %s76_s0  ;;  %p80_p0 = scmp.lt.u32.totalorder %s76_s0, %s127_s1 }
  0x1f   :  { %p82_p1 = pnand %p80_p0, %p77_p13 }
  0x21   :  { %85 = shalt.err (!%p82_p1)
}
  0x22   :  { %34 = dma.vmem_to_hbm [thread:$0]  %s32_s19, 256, %s127_s1, [#allocation4]  }
  0x23   :  { %88 = dma.done.wait [#allocation4], 256  }
  0x24   :  { %89 = vsyncadd [#allocation4], 4294967040 }
  0x25   :  { %38 = vsyncpa [#allocation3], 1 }
  0x26   :  { %39 = vsyncpa [#allocation4], 1 }

</bundles_post_ra>
